<compile_context>
chip_gen: v5e
topology: v5e:2x2
jax: 0.10.0
libtpu: 0.0.40
codegen_flags: <defaults>
</compile_context>

<pallas_src>
import jax
import jax.numpy as jnp
from jax import lax
from jax.experimental import pallas as pl
from jax.experimental.pallas import tpu as pltpu


def _hash_u32(x):
    """lowbias32 integer mix (good avalanche); works on uint32 scalars and arrays."""
    x = x ^ (x >> 16)
    x = x * jnp.uint32(0x7FEB352D)
    x = x ^ (x >> 15)
    x = x * jnp.uint32(0x846CA68B)
    x = x ^ (x >> 16)
    return x


def _add_noise_kernel(seed_ref, params_ref, x_ref, o_ref):
    # seed_ref:   (1,)   int32    SMEM (scalar prefetch)
    # params_ref: (3, N) float32  SMEM (scalar prefetch)
    #             [0, n] k_px       = b*c*s                 (1.0 when jitter not applied)
    #             [1, n] k_gray     = b*c*(1-s)              (0.0 when jitter not applied)
    #             [2, n] noise_gain = std * apply_flag       (0.0 when noise not applied)
    # x_ref:      (1, C, TR, 128) uint8/float   VMEM tile
    # o_ref:      (1, C, TR, 128) f32 (or bf16) VMEM tile
    n = pl.program_id(0)
    t = pl.program_id(1)

    # In-kernel uint8 -> f32 cast (HBM read stays 1 byte/elem).
    x = x_ref[0].astype(jnp.float32)                    # (C, TR, 128)
    C, TR, L = x.shape

    k_px = params_ref[0, n]
    k_gray = params_ref[1, n]
    noise_gain = params_ref[2, n]

    # ColorJitter brightness*contrast*saturation fused:
    #   b*c*(s*x + (1-s)*gray) = k_px*x + k_gray*gray
    if C == 3:
        gray = 0.299 * x[0] + 0.587 * x[1] + 0.114 * x[2]   # (TR, 128)
        y = k_px * x + k_gray * gray[None]
    else:
        # Non-RGB: saturation blend degenerates to a pure scale (k_px + k_gray == b*c).
        y = (k_px + k_gray) * x
    # TODO(synk): ColorJitter hue shift (RGB<->HSV round trip) not implemented.
    # TODO(synk): RandomPlasmaShadow (diamond-square plasma fractal mask) not implemented.
    # TODO(synk): kornia contrast blends with the per-image mean gray; the (1-c)*mean term
    #             would need a per-image reduction pass and is approximated multiplicatively.

    @pl.when(noise_gain == 0.0)
    def _():
        o_ref[0] = y.astype(o_ref.dtype)

    @pl.when(noise_gain != 0.0)
    def _():
        # Counter-based hash PRNG (unique stream per sample/tile/element) + Box-Muller.
        seed_u = seed_ref[0].astype(jnp.uint32)
        base = _hash_u32(seed_u ^ (n.astype(jnp.uint32) * jnp.uint32(0x9E3779B1)))
        base = _hash_u32(base ^ (t.astype(jnp.uint32) * jnp.uint32(0x85EBCA77)))

        idx = (lax.broadcasted_iota(jnp.int32, (C, TR, L), 0) * (TR * L)
               + lax.broadcasted_iota(jnp.int32, (C, TR, L), 1) * L
               + lax.broadcasted_iota(jnp.int32, (C, TR, L), 2)).astype(jnp.uint32)
        bits = _hash_u32(base + idx)

        # Two 16-bit uniforms per element; u1 strictly in (0, 1).
        u1 = ((bits >> 16).astype(jnp.float32) + 0.5) * jnp.float32(1.0 / 65536.0)
        u2 = (bits & jnp.uint32(0xFFFF)).astype(jnp.float32) * jnp.float32(1.0 / 65536.0)
        r = jnp.sqrt(-2.0 * jnp.log(u1))
        noise = r * jnp.cos(jnp.float32(6.283185307179586) * u2)

        o_ref[0] = (y + noise_gain * noise).astype(o_ref.dtype)


def _add_noise_pallas(x, seed, params, *, max_tile_rows=2048, out_dtype=jnp.float32):
    """Streaming elementwise augmentation kernel.

    x:      (N, C, H, W) uint8 (or float)
    seed:   (1,)   int32
    params: (3, N) float32  (see _add_noise_kernel)
    returns (N, C, H, W) in `out_dtype` (float32 by default for parity with PyTorch).
    """
    N, C, H, W = x.shape
    HW = H * W

    if HW % 128 == 0:
        rows = HW // 128
        x4 = x.reshape(N, C, rows, 128)          # lane-dense spatial layout, no extra copy
        padded = False
    else:
        # TODO(synk): handle non-128-divisible spatial extents with masked lane-tail blocks
        # instead of this wrapper-side pad/slice round trip.
        pad = (-HW) % 128
        x4 = jnp.pad(x.reshape(N, C, HW), ((0, 0), (0, 0), (0, pad))).reshape(N, C, -1, 128)
        rows = x4.shape[2]
        padded = True

    # Fixed large tile; Pallas masks the (possibly partial) tail block.  For images with
    # rows <= max_tile_rows we take the full spatial extent in one block (legal even when
    # rows is small / not a multiple of 8).
    tr = rows if rows <= max_tile_rows else max_tile_rows
    num_tiles = pl.cdiv(rows, tr)

    out4 = pl.pallas_call(
        _add_noise_kernel,
        out_shape=jax.ShapeDtypeStruct((N, C, rows, 128), out_dtype),
        grid_spec=pltpu.PrefetchScalarGridSpec(
            num_scalar_prefetch=2,
            grid=(N, num_tiles),
            in_specs=[
                pl.BlockSpec((1, C, tr, 128), lambda n, t, seed, prm: (n, 0, t, 0)),
            ],
            out_specs=pl.BlockSpec((1, C, tr, 128), lambda n, t, seed, prm: (n, 0, t, 0)),
        ),
        compiler_params=pltpu.CompilerParams(
            dimension_semantics=("parallel", "parallel"),
            vmem_limit_bytes=48 * 1024 * 1024,   # fits the 64 MiB v7x VMEM with headroom
        ),
    )(seed, params, x4)

    if padded:
        out = out4.reshape(N, C, rows * 128)[:, :, :HW].reshape(N, C, H, W)
    else:
        out = out4.reshape(N, C, H, W)
    return out


class AddNoisePallas:
    """Mirror of the PyTorch AddNoise module (ColorJitter + GaussianNoise)."""

    def __init__(self, brightness=0.1, contrast=0.1, saturation=0.1, hue=0.1,
                 jitter_p=0.9, shadow_p=0.9, noise_std=3.0, noise_p=0.9,
                 out_dtype=jnp.float32):
        self.brightness = brightness
        self.contrast = contrast
        self.saturation = saturation
        self.hue = hue            # TODO(synk): hue shift not applied in the kernel
        self.jitter_p = jitter_p
        self.shadow_p = shadow_p  # TODO(synk): plasma shadow not applied in the kernel
        self.noise_std = noise_std
        self.noise_p = noise_p
        self.out_dtype = out_dtype  # bf16 halves kernel HBM writeback (semantics change)

    def __call__(self, x, key):
        N = x.shape[0]
        kb, kc, ks, kj, kn, kseed = jax.random.split(key, 6)

        jit_on = (jax.random.uniform(kj, (N,)) < self.jitter_p).astype(jnp.float32)
        bright = 1.0 + jit_on * jax.random.uniform(
            kb, (N,), minval=-self.brightness, maxval=self.brightness)
        contrast = 1.0 + jit_on * jax.random.uniform(
            kc, (N,), minval=-self.contrast, maxval=self.contrast)
        sat = 1.0 + jit_on * jax.random.uniform(
            ks, (N,), minval=-self.saturation, maxval=self.saturation)

        noise_on = (jax.random.uniform(kn, (N,)) < self.noise_p).astype(jnp.float32)
        noise_gain = self.noise_std * noise_on

        bc = bright * contrast
        k_px = bc * sat
        k_gray = bc * (1.0 - sat)

        # (3, N): long axis last so the SMEM allocation stays tiny.
        params = jnp.stack([k_px, k_gray, noise_gain], axis=0).astype(jnp.float32)
        seed = jax.random.randint(kseed, (1,), 0, jnp.iinfo(jnp.int32).max,
                                  dtype=jnp.int32)
        return _add_noise_pallas(x, seed, params, out_dtype=self.out_dtype)


if __name__ == "__main__":
    key = jax.random.PRNGKey(0)
    N, C, H, W = 2, 3, 16, 16
    kx, kcall = jax.random.split(key)
    x_u8 = jax.random.randint(kx, (N, C, H, W), 0, 256, dtype=jnp.int32).astype(jnp.uint8)

    # 1) Data-path check with identity parameters (k_px=1, k_gray=0, noise gain=0):
    #    the kernel should reduce to the uint8 -> float32 cast.
    ident_params = jnp.concatenate(
        [jnp.ones((1, N), jnp.float32),          # k_px
         jnp.zeros((1, N), jnp.float32),         # k_gray
         jnp.zeros((1, N), jnp.float32)], axis=0)  # noise gain
    seed0 = jnp.zeros((1,), jnp.int32)
    out_id = jax.block_until_ready(_add_noise_pallas(x_u8, seed0, ident_params))
    ref = x_u8.astype(jnp.float32)
    assert out_id.shape == (N, C, H, W)
    assert out_id.dtype == jnp.float32
    assert jnp.allclose(out_id, ref, atol=1e-3), "identity path mismatch vs cast reference"

    # 2) Full random augmentation (ColorJitter + Gaussian noise).
    mod = AddNoisePallas()
    out = jax.block_until_ready(mod(x_u8, kcall))
    assert out.shape == (N, C, H, W)
    assert out.dtype == jnp.float32
    assert bool(jnp.all(jnp.isfinite(out))), "non-finite values in augmented output"

    print("KERNEL_OK")
</pallas_src>

<mosaic_0001>
module attributes {stable_mosaic.version = 11 : i64} {
  func.func @_add_noise_kernel(%arg0: i32, %arg1: i32, %arg2: memref<1xi32, #tpu.memory_space<smem>>, %arg3: memref<3x2xf32, #tpu.memory_space<smem>>, %arg4: memref<1x3x2x128xi8, #tpu.memory_space<vmem>>, %arg5: memref<1x3x2x128xf32, #tpu.memory_space<vmem>>) attributes {dimension_semantics = [#tpu.dimension_semantics<parallel>, #tpu.dimension_semantics<parallel>], iteration_bounds = array<i64: 2, 1>, scalar_prefetch = 2 : i64, scratch_operands = 0 : i64, tpu.core_type = #tpu.core_type<tc>, window_params = [{transform_indices = @transform_0, window_bounds = array<i64: 1, 3, 2, 128>}, {transform_indices = @transform_1, window_bounds = array<i64: 1, 3, 2, 128>}]} {
    %c0 = arith.constant 0 : index
    %c0_0 = arith.constant 0 : index
    %c0_1 = arith.constant 0 : index
    %c0_2 = arith.constant 0 : index
    %0 = vector.load %arg4[%c0, %c0_0, %c0_1, %c0_2] : memref<1x3x2x128xi8, #tpu.memory_space<vmem>>, vector<1x3x2x128xi8>
    %1 = vector.shape_cast %0 : vector<1x3x2x128xi8> to vector<3x2x128xi8>
    %2 = arith.uitofp %1 : vector<3x2x128xi8> to vector<3x2x128xf32>
    %c0_3 = arith.constant 0 : index
    %3 = arith.index_cast %arg0 : i32 to index
    %4 = memref.load %arg3[%c0_3, %3] : memref<3x2xf32, #tpu.memory_space<smem>>
    %c1 = arith.constant 1 : index
    %5 = arith.index_cast %arg0 : i32 to index
    %6 = memref.load %arg3[%c1, %5] : memref<3x2xf32, #tpu.memory_space<smem>>
    %c2 = arith.constant 2 : index
    %7 = arith.index_cast %arg0 : i32 to index
    %8 = memref.load %arg3[%c2, %7] : memref<3x2xf32, #tpu.memory_space<smem>>
    %9 = vector.extract_strided_slice %2 {offsets = [0, 0, 0], sizes = [1, 2, 128], strides = [1, 1, 1]} : vector<3x2x128xf32> to vector<1x2x128xf32>
    %10 = vector.shape_cast %9 : vector<1x2x128xf32> to vector<2x128xf32>
    %cst = arith.constant 2.990000e-01 : f32
    %11 = vector.broadcast %cst : f32 to vector<2x128xf32>
    %12 = arith.mulf %11, %10 : vector<2x128xf32>
    %13 = vector.extract_strided_slice %2 {offsets = [1, 0, 0], sizes = [1, 2, 128], strides = [1, 1, 1]} : vector<3x2x128xf32> to vector<1x2x128xf32>
    %14 = vector.shape_cast %13 : vector<1x2x128xf32> to vector<2x128xf32>
    %cst_4 = arith.constant 5.870000e-01 : f32
    %15 = vector.broadcast %cst_4 : f32 to vector<2x128xf32>
    %16 = arith.mulf %15, %14 : vector<2x128xf32>
    %17 = arith.addf %12, %16 : vector<2x128xf32>
    %18 = vector.extract_strided_slice %2 {offsets = [2, 0, 0], sizes = [1, 2, 128], strides = [1, 1, 1]} : vector<3x2x128xf32> to vector<1x2x128xf32>
    %19 = vector.shape_cast %18 : vector<1x2x128xf32> to vector<2x128xf32>
    %cst_5 = arith.constant 1.140000e-01 : f32
    %20 = vector.broadcast %cst_5 : f32 to vector<2x128xf32>
    %21 = arith.mulf %20, %19 : vector<2x128xf32>
    %22 = arith.addf %17, %21 : vector<2x128xf32>
    %23 = vector.broadcast %4 : f32 to vector<3x2x128xf32>
    %24 = arith.mulf %23, %2 : vector<3x2x128xf32>
    %25 = vector.shape_cast %22 : vector<2x128xf32> to vector<1x2x128xf32>
    %26 = vector.broadcast %6 : f32 to vector<1x2x128xf32>
    %27 = arith.mulf %26, %25 : vector<1x2x128xf32>
    %28 = vector.broadcast %27 : vector<1x2x128xf32> to vector<3x2x128xf32>
    %29 = arith.addf %24, %28 : vector<3x2x128xf32>
    %cst_6 = arith.constant 0.000000e+00 : f32
    %30 = arith.cmpf oeq, %8, %cst_6 : f32
    %31 = arith.extui %30 : i1 to i32
    %c0_i32 = arith.constant 0 : i32
    %32 = arith.cmpi ne, %31, %c0_i32 : i32
    scf.if %32 {
      %c0_9 = arith.constant 0 : index
      %c0_10 = arith.constant 0 : index
      %c0_11 = arith.constant 0 : index
      %c0_12 = arith.constant 0 : index
      %36 = vector.load %arg5[%c0_9, %c0_10, %c0_11, %c0_12] : memref<1x3x2x128xf32, #tpu.memory_space<vmem>>, vector<1x3x2x128xf32>
      %37 = vector.shape_cast %36 : vector<1x3x2x128xf32> to vector<3x2x128xf32>
      %38 = vector.shape_cast %29 : vector<3x2x128xf32> to vector<1x3x2x128xf32>
      tpu.vector_store %arg5[%c0_9, %c0_10, %c0_11, %c0_12], %38 {strides = array<i32>} : memref<1x3x2x128xf32, #tpu.memory_space<vmem>>, vector<1x3x2x128xf32>,
    } else {
    }
    %cst_7 = arith.constant 0.000000e+00 : f32
    %33 = arith.cmpf one, %8, %cst_7 : f32
    %34 = arith.extui %33 : i1 to i32
    %c0_i32_8 = arith.constant 0 : i32
    %35 = arith.cmpi ne, %34, %c0_i32_8 : i32
    scf.if %35 {
      %c0_9 = arith.constant 0 : index
      %36 = memref.load %arg2[%c0_9] : memref<1xi32, #tpu.memory_space<smem>>
      %c-1640531535_i32 = arith.constant -1640531535 : i32
      %37 = arith.muli %arg0, %c-1640531535_i32 : i32
      %38 = arith.xori %36, %37 : i32
      %c16_i32 = arith.constant 16 : i32
      %39 = arith.shrui %38, %c16_i32 : i32
      %40 = arith.xori %38, %39 : i32
      %c2146121005_i32 = arith.constant 2146121005 : i32
      %41 = arith.muli %40, %c2146121005_i32 : i32
      %c15_i32 = arith.constant 15 : i32
      %42 = arith.shrui %41, %c15_i32 : i32
      %43 = arith.xori %41, %42 : i32
      %c-2073254261_i32 = arith.constant -2073254261 : i32
      %44 = arith.muli %43, %c-2073254261_i32 : i32
      %c16_i32_10 = arith.constant 16 : i32
      %45 = arith.shrui %44, %c16_i32_10 : i32
      %46 = arith.xori %44, %45 : i32
      %c-2048144777_i32 = arith.constant -2048144777 : i32
      %47 = arith.muli %arg1, %c-2048144777_i32 : i32
      %48 = arith.xori %46, %47 : i32
      %c16_i32_11 = arith.constant 16 : i32
      %49 = arith.shrui %48, %c16_i32_11 : i32
      %50 = arith.xori %48, %49 : i32
      %c2146121005_i32_12 = arith.constant 2146121005 : i32
      %51 = arith.muli %50, %c2146121005_i32_12 : i32
      %c15_i32_13 = arith.constant 15 : i32
      %52 = arith.shrui %51, %c15_i32_13 : i32
      %53 = arith.xori %51, %52 : i32
      %c-2073254261_i32_14 = arith.constant -2073254261 : i32
      %54 = arith.muli %53, %c-2073254261_i32_14 : i32
      %c16_i32_15 = arith.constant 16 : i32
      %55 = arith.shrui %54, %c16_i32_15 : i32
      %56 = arith.xori %54, %55 : i32
      %57 = tpu.iota {dimensions = array<i32: 0>} : vector<3x2x128xi32>
      %c256_i32 = arith.constant 256 : i32
      %58 = vector.broadcast %c256_i32 : i32 to vector<3x2x128xi32>
      %59 = arith.muli %57, %58 : vector<3x2x128xi32>
      %60 = tpu.iota {dimensions = array<i32: 1>} : vector<3x2x128xi32>
      %c128_i32 = arith.constant 128 : i32
      %61 = vector.broadcast %c128_i32 : i32 to vector<3x2x128xi32>
      %62 = arith.muli %60, %61 : vector<3x2x128xi32>
      %63 = arith.addi %59, %62 : vector<3x2x128xi32>
      %64 = tpu.iota {dimensions = array<i32: 2>} : vector<3x2x128xi32>
      %65 = arith.addi %63, %64 : vector<3x2x128xi32>
      %66 = vector.broadcast %56 : i32 to vector<3x2x128xi32>
      %67 = arith.addi %66, %65 : vector<3x2x128xi32>
      %c16_i32_16 = arith.constant 16 : i32
      %68 = vector.broadcast %c16_i32_16 : i32 to vector<3x2x128xi32>
      %69 = arith.shrui %67, %68 : vector<3x2x128xi32>
      %70 = arith.xori %67, %69 : vector<3x2x128xi32>
      %c2146121005_i32_17 = arith.constant 2146121005 : i32
      %71 = vector.broadcast %c2146121005_i32_17 : i32 to vector<3x2x128xi32>
      %72 = arith.muli %70, %71 : vector<3x2x128xi32>
      %c15_i32_18 = arith.constant 15 : i32
      %73 = vector.broadcast %c15_i32_18 : i32 to vector<3x2x128xi32>
      %74 = arith.shrui %72, %73 : vector<3x2x128xi32>
      %75 = arith.xori %72, %74 : vector<3x2x128xi32>
      %c-2073254261_i32_19 = arith.constant -2073254261 : i32
      %76 = vector.broadcast %c-2073254261_i32_19 : i32 to vector<3x2x128xi32>
      %77 = arith.muli %75, %76 : vector<3x2x128xi32>
      %c16_i32_20 = arith.constant 16 : i32
      %78 = vector.broadcast %c16_i32_20 : i32 to vector<3x2x128xi32>
      %79 = arith.shrui %77, %78 : vector<3x2x128xi32>
      %80 = arith.xori %77, %79 : vector<3x2x128xi32>
      %c16_i32_21 = arith.constant 16 : i32
      %81 = vector.broadcast %c16_i32_21 : i32 to vector<3x2x128xi32>
      %82 = arith.shrui %80, %81 : vector<3x2x128xi32>
      %83 = arith.uitofp %82 : vector<3x2x128xi32> to vector<3x2x128xf32>
      %cst_22 = arith.constant 5.000000e-01 : f32
      %84 = vector.broadcast %cst_22 : f32 to vector<3x2x128xf32>
      %85 = arith.addf %83, %84 : vector<3x2x128xf32>
      %cst_23 = arith.constant 1.52587891E-5 : f32
      %86 = vector.broadcast %cst_23 : f32 to vector<3x2x128xf32>
      %87 = arith.mulf %85, %86 : vector<3x2x128xf32>
      %c65535_i32 = arith.constant 65535 : i32
      %88 = vector.broadcast %c65535_i32 : i32 to vector<3x2x128xi32>
      %89 = arith.andi %80, %88 : vector<3x2x128xi32>
      %90 = arith.uitofp %89 : vector<3x2x128xi32> to vector<3x2x128xf32>
      %cst_24 = arith.constant 1.52587891E-5 : f32
      %91 = vector.broadcast %cst_24 : f32 to vector<3x2x128xf32>
      %92 = arith.mulf %90, %91 : vector<3x2x128xf32>
      %93 = math.log %87 : vector<3x2x128xf32>
      %cst_25 = arith.constant -2.000000e+00 : f32
      %94 = vector.broadcast %cst_25 : f32 to vector<3x2x128xf32>
      %95 = arith.mulf %94, %93 : vector<3x2x128xf32>
      %96 = math.sqrt %95 : vector<3x2x128xf32>
      %cst_26 = arith.constant 6.28318548 : f32
      %97 = vector.broadcast %cst_26 : f32 to vector<3x2x128xf32>
      %98 = arith.mulf %97, %92 : vector<3x2x128xf32>
      %99 = math.cos %98 : vector<3x2x128xf32>
      %100 = arith.mulf %96, %99 : vector<3x2x128xf32>
      %101 = vector.broadcast %8 : f32 to vector<3x2x128xf32>
      %102 = arith.mulf %101, %100 : vector<3x2x128xf32>
      %103 = arith.addf %29, %102 : vector<3x2x128xf32>
      %c0_27 = arith.constant 0 : index
      %c0_28 = arith.constant 0 : index
      %c0_29 = arith.constant 0 : index
      %c0_30 = arith.constant 0 : index
      %104 = vector.load %arg5[%c0_27, %c0_28, %c0_29, %c0_30] : memref<1x3x2x128xf32, #tpu.memory_space<vmem>>, vector<1x3x2x128xf32>
      %105 = vector.shape_cast %104 : vector<1x3x2x128xf32> to vector<3x2x128xf32>
      %106 = vector.shape_cast %103 : vector<3x2x128xf32> to vector<1x3x2x128xf32>
      tpu.vector_store %arg5[%c0_27, %c0_28, %c0_29, %c0_30], %106 {strides = array<i32>} : memref<1x3x2x128xf32, #tpu.memory_space<vmem>>, vector<1x3x2x128xf32>,
    } else {
    }
    return
  }
  func.func @transform_0(%arg0: i32, %arg1: i32, %arg2: memref<1xi32, #tpu.memory_space<smem>>, %arg3: memref<3x2xf32, #tpu.memory_space<smem>>) -> (i32, i32, i32, i32) {
    %c0_i32 = arith.constant 0 : i32
    %c0_i32_0 = arith.constant 0 : i32
    %c0_i32_1 = arith.constant 0 : i32
    return %arg0, %c0_i32, %arg1, %c0_i32_0 : i32, i32, i32, i32
  }
  func.func @transform_1(%arg0: i32, %arg1: i32, %arg2: memref<1xi32, #tpu.memory_space<smem>>, %arg3: memref<3x2xf32, #tpu.memory_space<smem>>) -> (i32, i32, i32, i32) {
    %c0_i32 = arith.constant 0 : i32
    %c0_i32_0 = arith.constant 0 : i32
    %c0_i32_1 = arith.constant 0 : i32
    return %arg0, %c0_i32, %arg1, %c0_i32_0 : i32, i32, i32, i32
  }
}

</mosaic_0001>

<bundles_post_ra>
// kernel: tpu_custom_call.1
= control target key start
LH: loop header
LB: loop body
LE: loop exit
PB: predicated region body
PF: predicated region fallthrough
CT: control target
= control target key end

     0   :  { %s1123_s17 = smov [#allocation4]   ;;  %s1663_s0 = inlined_call_operand.<no memory space> [shape: s32[1], index: 0, kind: input, shape index: {}]   ;;  %s1664_s1 = inlined_call_operand.vmem [shape: f32[3,2], index: 1, kind: input, shape index: {}]   ;;  %s1665_s2 = inlined_call_operand.vmem [shape: u8[2,3,2,128], index: 2, kind: input, shape index: {}]   ;;  %s1666_s3 = inlined_call_operand.hbm [shape: f32[2,3,2,128], index: 3, kind: output, shape index: {}]  }
   0x1   :  { %8 = sst [smem:[#allocation3]] %s1663_s0  ;;  %s10_s16 = sshll.u32 %s1664_s1, 4  ;;  %s11_s16 = int_to_ptr.vmem [resolvable:$true] %s10_s16 }
   0x2   :  { %13 = dma.vmem_to_smem %s11_s16, 64, %s1123_s17, [#allocation2] }
   0x3   :  { %1093 = dma.done.wait [#allocation2], 64 }
   0x4   :  { %1094 = vsyncadd [#allocation2], 4294967232 }
   0x5   :  { %16 = sfence }
   0x6   :  { %17 = vsyncpa [#allocation6], 0 }
   0x7   :  { %19 = vsyncpa [#allocation6 + $0x1], 0  ;;  %s1159_s18 = smov 0   ;;  %s1161_s19 = smov 0  }
   0x8   :  { %s1163_s20 = smov 0   ;;  %s1165_s21 = smov 0  }
   0x9   :  { %s1167_s0 = smov 0   ;;  %s1169_s22 = smov 0  }
   0xa LB: > { %s923_s1 = sadd.s32 4294967295, %s1121_s22   ;;  %s924_s23 = sadd.s32 4294967294, %s1121_s22   ;;  %s1121_s22 = sphi %s1169_s22, %s25_s22   ;;  %s1117_s0 = sphi %s1167_s0, %s1679_s0   ;;  %s1113_s21 = sphi %s1165_s21, %s1678_s21   ;;  %s1109_s20 = sphi %s1163_s20, %s1677_s20   ;;  %s1105_s19 = sphi %s1161_s19, %s1676_s19   ;;  %s1101_s18 = sphi %s1159_s18, %s1675_s18  }
   0xb   : > { %s37_s24 = sadd.s32 1, %s1117_s0  ;;  %s74_s25 = sadd.s32 1, %s1109_s20 }
   0xc   : > { %p39_p0 = scmp.ge.s32.totalorder %s37_s24, 2  ;;  %p84_p1 = scmp.ne.s32.totalorder %s1109_s20, %s1105_s19 }
   0xd   : > { %p85_p2 = scmp.eq.s32.totalorder %s923_s1, 1  ;;  %p90_p3 = scmp.ne.s32.totalorder %s1105_s19, %s1101_s18 }
   0xe   : > { %s1681_s24 = smov (%p39_p0, %s37_s24), 0  ;;  %p91_p5 = scmp.eq.s32.totalorder %s924_s23, 1 }
   0xf   : > { %p1199_p4 = por %p85_p2, %p84_p1  ;;  %s69_s27 = ssub.s32 %s1117_s0, %s1681_s24 }
  0x10   : > { %p927_p6 = scmp.ge.s32.totalorder %s1121_s22, 1  ;;  %p72_p7 = scmp.eq.s32.totalorder %s69_s27, 0 }
  0x11   : > { %p1206_p8 = por %p91_p5, %p90_p3  ;;  %p119_p9 = scmp.lt.s32.totalorder %s1121_s22, 3 }
  0x12   : > { %s1212_s29 = scalar_select %p72_p7, %s1109_s20, %s74_s25  }
  0x13   : > { %p120_p10 = pnand %p927_p6, %p119_p9 }
  0x14   : > { %s138_s30 = sand.u32 (!%p120_p10), 1, %s1105_s19   ;;  %p141_p11 = scmp.lt.s32.totalorder (!%p120_p10), %s1113_s21, 1 }
  0x15   : > { %123 = sbr.rel (%p120_p10) target bundleno = 295 (0x127), region = 24  ;;  %s160_s5 = sld [smem:[#allocation4 + %s1113_s21]] (!%p120_p10) }
  0x16   : > { %s1218_s4 = smul.u32 (!%p120_p10), 6, %s138_s30  ;;  %s161_s7 = sshra.s32 (!%p120_p10), %s1113_s21, 7 }
  0x17   : > { %s945_s9 = sshll.u32 (!%p120_p10), %s161_s7, 7  ;;  %s166_s11 = sand.u32 (!%p120_p10), 127, %s1113_s21 }
  0x18   : > { %s946_s10 = sadd.s32 (!%p120_p10), 128, %s945_s9  ;;  %s948_s16 = sadd.s32 (!%p120_p10), 256, %s945_s9 }
  0x19   : > { %s167_s15 = sadd.s32 (!%p120_p10), %s946_s10, %s166_s11  ;;  %s171_s1 = sadd.s32 (!%p120_p10), %s948_s16, %s166_s11 }
  0x1a   : > { %s142_s6 = scalar_select %p141_p11, %s1113_s21, 1 }
  0x1b   : > { %s168_s17 = sld [smem:[#allocation4 + %s167_s15]]  ;;  %v178_v15 = vstv %s160_s5  ;;  %s1237_s25 = scalar_lea.vmem [#allocation5], %s1218_s4 }
  0x1c   : > { %s950_s8 = smul.u32 3, %s142_s6  ;;  %s1227_s23 = sld [smem:[#allocation4 + %s171_s1]] }
  0x1e   : > { %s147_s14 = scalar_lea.vmem %s1665_s2, %s950_s8 }
  0x1f   : > { %v148_v0 = vld [vmem:[%s147_s14] sm:$0x1]  ;;  %v149_v1 = vld [vmem:[%s147_s14 + $0x1] sm:$0x1]  ;;  %v150_v2 = vld [vmem:[%s147_s14 + $0x2] sm:$0x1] }
  0x20   : > { %v151_v3 = vunpack.c.0.s8 %v148_v0  ;;  %v152_v4 = vunpack.c.0.s8 %v149_v1  ;;  %v153_v5 = vunpack.c.0.s8 %v150_v2 }
  0x21   : > { %v182_v17 = vstv %s168_s17 }
  0x22   : > { %v154_v6 = vand.u32 255, %v151_v3  ;;  %v155_v7 = vand.u32 255, %v152_v4  ;;  %v156_v8 = vand.u32 255, %v153_v5  ;;  %p187_p12 = scmp.eq.f32.partialorder %s1227_s23, 0.0 }
  0x24   : > { %v157_v9 = vcvt.s32.f32 %v154_v6  ;;  %v158_v10 = vcvt.s32.f32 %v155_v7  ;;  %v159_v11 = vcvt.s32.f32 %v156_v8 }
  0x26   : > { %v173_v12 = vmul.f32 0.299, %v157_v9  ;;  %v174_v13 = vmul.f32 0.587, %v158_v10  ;;  %v176_v14 = vmul.f32 0.114, %v159_v11  ;;  %v179_v19 = vmul.f32 %v178_v15, %v157_v9 }
  0x27   : > { %v180_v20 = vmul.f32 %v178_v15, %v158_v10  ;;  %v181_v21 = vmul.f32 %v178_v15, %v159_v11 }
  0x28   : > { %v175_v16 = vadd.f32 %v174_v13, %v173_v12 }
  0x2a   : > { %v177_v18 = vadd.f32 %v176_v14, %v175_v16  ;;  %190 = sbr.rel (!%p187_p12) target bundleno = 51 (0x33), region = 28 }
  0x2c   : > { %v183_v22 = vmul.f32 %v182_v17, %v177_v18 }
  0x2e   : > { %v1230_v23 = vadd.f32 %v183_v22, %v179_v19  ;;  %v1232_v24 = vadd.f32 %v183_v22, %v180_v20  ;;  %v1234_v25 = vadd.f32 %v183_v22, %v181_v21 }
  0x30   : > { %191 = vst [vmem:[%s1237_s25] sm:$0x3] %v1230_v23 }
  0x31   : > { %192 = vst [vmem:[%s1237_s25 + $0x2] sm:$0x3] %v1232_v24 }
  0x32   : > { %193 = vst [vmem:[%s1237_s25 + $0x4] sm:$0x3] %v1234_v25 }
  0x33 PF: > { %p194_p13 = scmp.ne.f32.partialorder %s1227_s23, 0.0 }
  0x34   : > { %s198_s27 = sld [smem:[#allocation3]] (%p194_p13)  ;;  %s199_s5 = smul.u32 (%p194_p13), 2654435761, %s1113_s21  ;;  %v219_v26 = vlaneseq (%p194_p13) }
  0x35   : > { %197 = sbr.rel (!%p194_p13) target bundleno = 278 (0x116), region = 32 }
  0x36   : > { %v220_v27 = vshrl.u32 (%p194_p13), %v219_v26, 7  ;;  %v225_v31 = vand.u32 (%p194_p13), 127, %v219_v26 }
  0x38   : > { %v221_v28 = vmul.u32 (%p194_p13), 128, %v220_v27 }
  0x3a   : > { %s200_s6 = sxor.u32 %s199_s5, %s198_s27  ;;  %v222_v29 = vadd.s32 256, %v221_v28  ;;  %v223_v30 = vadd.s32 512, %v221_v28  ;;  %v226_v32 = vadd.s32 %v225_v31, %v221_v28 }
  0x3b   : > { %s201_s4 = sshrl.u32 %s200_s6, 16 }
  0x3c   : > { %s202_s7 = sxor.u32 %s201_s4, %s200_s6  ;;  %v227_v33 = vadd.s32 %v225_v31, %v222_v29  ;;  %v228_v34 = vadd.s32 %v225_v31, %v223_v30 }
  0x3d   : > { %s203_s8 = smul.u32 2146121005, %s202_s7 }
  0x3f   : > { %s204_s9 = sshrl.u32 %s203_s8, 15 }
  0x40   : > { %s205_s10 = sxor.u32 %s204_s9, %s203_s8 }
  0x41   : > { %s206_s11 = smul.u32 2221713035, %s205_s10 }
  0x43   : > { %s207_s12 = sshrl.u32 %s206_s11, 16 }
  0x44   : > { %s208_s13 = sxor.u32 %s207_s12, %s206_s11 }
  0x45   : > { %s211_s14 = sshrl.u32 %s208_s13, 16 }
  0x46   : > { %s212_s15 = sxor.u32 %s211_s14, %s208_s13 }
  0x47   : > { %s213_s16 = smul.u32 2146121005, %s212_s15 }
  0x49   : > { %s214_s17 = sshrl.u32 %s213_s16, 15 }
  0x4a   : > { %s215_s1 = sxor.u32 %s214_s17, %s213_s16 }
  0x4b   : > { %s216_s27 = smul.u32 2221713035, %s215_s1 }
  0x4d   : > { %s217_s5 = sshrl.u32 %s216_s27, 16 }
  0x4e   : > { %s218_s6 = sxor.u32 %s217_s5, %s216_s27 }
  0x4f   : > { %v229_v35 = vstv %s218_s6 }
  0x50   : > { %v230_v36 = vadd.s32 %v229_v35, %v226_v32  ;;  %v231_v37 = vadd.s32 %v229_v35, %v227_v33  ;;  %v232_v38 = vadd.s32 %v229_v35, %v228_v34 }
  0x52   : > { %v233_v39 = vshrl.u32 %v230_v36, 16  ;;  %v234_v40 = vshrl.u32 %v231_v37, 16  ;;  %v235_v41 = vshrl.u32 %v232_v38, 16 }
  0x54   : > { %v236_v42 = vxor.u32 %v233_v39, %v230_v36  ;;  %v237_v43 = vxor.u32 %v234_v40, %v231_v37  ;;  %v238_v44 = vxor.u32 %v235_v41, %v232_v38  ;;  %v1124_v37 = vmov 683565275  }
  0x55   : > { %v1125_v39 = vmov 2475754826  }
  0x56   : > { %v239_v45 = vmul.u32 2146121005, %v236_v42  ;;  %v240_v46 = vmul.u32 2146121005, %v237_v43  ;;  %v241_v49 = vmul.u32 2146121005, %v238_v44 }
  0x57   : > { %v1126_v43 = vmov 2131351028  }
  0x58   : > { %v242_v47 = vshrl.u32 %v239_v45, 15  ;;  %v243_v48 = vshrl.u32 %v240_v46, 15  ;;  %v244_v54 = vshrl.u32 %v241_v49, 15 }
  0x5a   : > { %v245_v50 = vxor.u32 %v242_v47, %v239_v45  ;;  %v246_v51 = vxor.u32 %v243_v48, %v240_v46  ;;  %v247_v59 = vxor.u32 %v244_v54, %v241_v49  ;;  %v1127_v45 = vmov 2102212464  }
  0x5c   : > { %v248_v52 = vmul.u32 2221713035, %v245_v50  ;;  %v249_v53 = vmul.u32 2221713035, %v246_v51  ;;  %v250_v62 = vmul.u32 2221713035, %v247_v59 }
  0x5e   : > { %v251_v55 = vshrl.u32 %v248_v52, 16  ;;  %v252_v56 = vshrl.u32 %v249_v53, 16  ;;  %v253_v4 = vshrl.u32 %v250_v62, 16 }
  0x60   : > { %v1247_v57 = vxor.u32 %v251_v55, %v248_v52  ;;  %v1249_v58 = vxor.u32 %v252_v56, %v249_v53  ;;  %v1253_v9 = vxor.u32 %v253_v4, %v250_v62  ;;  %v1128_v53 = vmov 920167782  }
  0x62   : > { %v284_v60 = vand.u32 65535, %v1247_v57  ;;  %v285_v61 = vand.u32 65535, %v1249_v58  ;;  %v286_v13 = vand.u32 65535, %v1253_v9  ;;  %v257_v29 = vshrl.u32 %v1247_v57, 16 }
  0x63   : > { %v258_v34 = vshrl.u32 %v1249_v58, 16 }
  0x64   : > { %v287_v63 = vshrl.u32 %v284_v60, 16  ;;  %v293_v0 = vshrl.u32 %v285_v61, 16  ;;  %v291_v2 = vcvt.s32.f32 %v284_v60  ;;  %v297_v8 = vcvt.s32.f32 %v285_v61 }
  0x65   : > { %v299_v17 = vshrl.u32 %v286_v13, 16  ;;  %v303_v28 = vcvt.s32.f32 %v286_v13  ;;  %v260_v47 = vshrl.u32 %v257_v29, 16  ;;  %v1277_v51 = vshrl.u32 %v258_v34, 16 }
  0x66   : > { %v289_v1 = vcvt.s32.f32 %v287_v63  ;;  %v295_v3 = vcvt.s32.f32 %v293_v0  ;;  %v1129_v60 = vmov 1326507024  }
  0x67   : > { %v301_v21 = vcvt.s32.f32 %v299_v17  ;;  %v262_v4 = vcvt.s32.f32 %v260_v47 }
  0x68   : > { %v290_v5 = vmul.f32 65536.0, %v289_v1  ;;  %v296_v7 = vmul.f32 65536.0, %v295_v3 }
  0x69   : > { %v302_v27 = vmul.f32 65536.0, %v301_v21 }
  0x6a   : > { %v292_v6 = vadd.f32 %v291_v2, %v290_v5  ;;  %v298_v11 = vadd.f32 %v297_v8, %v296_v7  ;;  %v1287_v2 = vcvt.s32.f32 %v257_v29  ;;  %v268_v8 = vcvt.s32.f32 %v1277_v51 }
  0x6b   : > { %v304_v35 = vadd.f32 %v303_v28, %v302_v27 }
  0x6c   : > { %v305_v10 = vmul.f32 1.5258789e-05, %v292_v6  ;;  %v306_v15 = vmul.f32 1.5258789e-05, %v298_v11 }
  0x6d   : > { %v307_v56 = vmul.f32 1.5258789e-05, %v304_v35 }
  0x6e   : > { %v1255_v12 = vmul.f32 6.2831855, %v305_v10  ;;  %v1259_v19 = vmul.f32 6.2831855, %v306_v15 }
  0x6f   : > { %v1291_v5 = vmul.f32 6.2831855, %v307_v56 }
  0x70   : > { %v359_v14 = vand.u32 2139095040, %v1255_v12  ;;  %v356_v22 = vand.u32 2147483647, %v1255_v12  ;;  %v513_v26 = vand.u32 2139095040, %v1259_v19  ;;  %v510_v13 = vand.u32 2147483647, %v1259_v19 }
  0x71   : > { %v667_v29 = vand.u32 2139095040, %v1291_v5 }
  0x72   : > { %v360_v16 = vshrl.u32 %v359_v14, 23  ;;  %v363_v30 = vand.u32 8388607, %v356_v22  ;;  %v514_v33 = vshrl.u32 %v513_v26, 23  ;;  %v1306_v26 = vmul.f32 65536.0, %v262_v4 }
  0x74   : > { %v933_v18 = vadd.s32 4294967169, %v360_v16  ;;  %v364_v41 = vor.u32 8388608, %v363_v30  ;;  %v936_v50 = vadd.s32 4294967169, %v514_v33 }
  0x76   : > { %v366_v20 = vadd.s32 1, %v933_v18  ;;  %v1284_v0 = vshll.u32 %v364_v41, 8  ;;  %v520_v1 = vadd.s32 1, %v936_v50 }
  0x78   : > { %vm367_vm0 = vcmp.gt.s32.totalorder %v366_v20, 0  ;;  %v405_v11 = vand.u32 65535, %v1284_v0  ;;  %vm521_vm5 = vcmp.gt.s32.totalorder %v520_v1, 0 }
  0x79   : > { %v368_v31 = vsel %vm367_vm0, %v366_v20, 0  ;;  %v406_v20 = vshrl.u32 %v1284_v0, 16 }
  0x7a   : > { %v370_v32 = vand.u32 31, %v368_v31  ;;  %v1269_v42 = vshrl.u32 %v368_v31, 5  ;;  %v1315_v31 = vand.u32 8388607, %v510_v13 }
  0x7c   : > { %v371_v36 = vsub.s32 32, %v370_v32  ;;  %v373_v38 = vshll.u32 %v1124_v37, %v370_v32  ;;  %v376_v40 = vshll.u32 %v1125_v39, %v370_v32  ;;  %v379_v44 = vshll.u32 %v1126_v43, %v370_v32 }
  0x7d   : > { %v382_v46 = vshll.u32 %v1127_v45, %v370_v32  ;;  %v385_v55 = vshll.u32 %v1128_v53, %v370_v32  ;;  %vm388_vm1 = vcmp.lt.s32.totalorder %v1269_v42, 1  ;;  %vm390_vm2 = vcmp.lt.s32.totalorder %v1269_v42, 3 }
  0x7e   : > { %v374_v48 = vshrl.u32 %v1125_v39, %v371_v36  ;;  %v377_v49 = vshrl.u32 %v1126_v43, %v371_v36  ;;  %v380_v52 = vshrl.u32 %v1127_v45, %v371_v36  ;;  %v383_v54 = vshrl.u32 %v1128_v53, %v371_v36 }
  0x7f   : > { %v386_v61 = vshrl.u32 %v1129_v60, %v371_v36  ;;  %vm389_vm3 = vcmp.lt.s32.totalorder %v1269_v42, 2  ;;  %vm391_vm4 = vcmp.lt.s32.totalorder %v1269_v42, 4  ;;  %v372_v14 = vshrl.u32 %v1124_v37, %v371_v36 }
  0x80   : > { %v375_v57 = vor.u32 %v374_v48, %v373_v38  ;;  %v378_v59 = vor.u32 %v377_v49, %v376_v40  ;;  %v381_v62 = vor.u32 %v380_v52, %v379_v44  ;;  %v384_v63 = vor.u32 %v383_v54, %v382_v46 }
  0x81   : > { %v387_v3 = vor.u32 %v386_v61, %v385_v55  ;;  %v522_v32 = vsel %vm521_vm5, %v520_v1, 0 }
  0x82   : > { %v396_v6 = vsel %vm388_vm1, %v375_v57, %v378_v59  ;;  %v397_v7 = vsel %vm391_vm4, %v384_v63, 920167782  ;;  %v400_v16 = vsel %vm388_vm1, %v378_v59, %v381_v62  ;;  %v393_v17 = vsel %vm391_vm4, %v381_v62, 2102212464 }
  0x83   : > { %v398_v10 = vsel %vm390_vm2, %v381_v62, %v397_v7  ;;  %v401_v18 = vsel %vm391_vm4, %v387_v3, 1326507024  ;;  %v392_v33 = vsel %vm388_vm1, %v372_v14, %v375_v57  ;;  %v394_v35 = vsel %vm390_vm2, %v378_v59, %v393_v17 }
  0x84   : > { %v399_v15 = vsel %vm389_vm3, %v396_v6, %v398_v10  ;;  %v402_v27 = vsel %vm390_vm2, %v384_v63, %v401_v18  ;;  %v1321_v46 = vshrl.u32 %v522_v32, 5  ;;  %v524_v50 = vand.u32 31, %v522_v32 }
  0x85   : > { %v429_v21 = vand.u32 65535, %v399_v15  ;;  %v430_v28 = vshrl.u32 %v399_v15, 16  ;;  %v403_v30 = vsel %vm389_vm3, %v400_v16, %v402_v27  ;;  %v395_v52 = vsel %vm389_vm3, %v392_v33, %v394_v35 }
  0x86   : > { %v407_v36 = vand.u32 65535, %v403_v30  ;;  %v408_v38 = vshrl.u32 %v403_v30, 16  ;;  %v1130_v6 = vmov 0   ;;  %v525_v10 = vsub.s32 32, %v524_v50 }
  0x87   : > { %v431_v40 = vmul.u32 %v429_v21, %v405_v11  ;;  %v432_v41 = vmul.u32 %v430_v28, %v405_v11  ;;  %v433_v44 = vmul.u32 %v429_v21, %v406_v20  ;;  %v434_v55 = vmul.u32 %v430_v28, %v406_v20 }
  0x88   : > { %v409_v47 = vmul.u32 %v407_v36, %v405_v11  ;;  %v410_v48 = vmul.u32 %v408_v38, %v405_v11  ;;  %v411_v49 = vmul.u32 %v407_v36, %v406_v20  ;;  %v412_v54 = vmul.u32 %v408_v38, %v406_v20 }
  0x89   : > { %v435_v56 = vshll.u32 %v432_v41, 16  ;;  %v436_v62 = vshrl.u32 %v432_v41, 16  ;;  %v437_v1 = vshll.u32 %v433_v44, 16  ;;  %v438_v11 = vshrl.u32 %v433_v44, 16 }
  0x8a   : > { %v413_v57 = vshll.u32 %v410_v48, 16  ;;  %v414_v61 = vshrl.u32 %v410_v48, 16  ;;  %v415_v59 = vshll.u32 %v411_v49, 16  ;;  %v416_v63 = vshrl.u32 %v411_v49, 16 }
  0x8b   : > { %vm439_vm6 = vc.u32 %v431_v40, %v435_v56  ;;  %v441_v3 = vadd.s32 %v435_v56, %v431_v40  ;;  %v527_v21 = vshll.u32 %v1124_v37, %v524_v50  ;;  %v528_v27 = vshrl.u32 %v1125_v39, %v525_v10 }
  0x8c   : > { %vm417_vm7 = vc.u32 %v409_v47, %v413_v57  ;;  %v419_v4 = vadd.s32 %v413_v57, %v409_v47  ;;  %v440_v7 = vsel %vm439_vm6, 1, %v1130_v6  ;;  %v530_v30 = vshll.u32 %v1125_v39, %v524_v50 }
  0x8d   : > { %v418_v42 = vsel %vm417_vm7, 1, %v1130_v6  ;;  %v442_v14 = vadd.s32 %v440_v7, %v434_v55  ;;  %vm443_vm8 = vc.u32 %v441_v3, %v437_v1  ;;  %v1328_v17 = vadd.s32 %v441_v3, %v437_v1 }
  0x8e   : > { %v420_v15 = vadd.s32 %v418_v42, %v412_v54  ;;  %vm421_vm9 = vc.u32 %v419_v4, %v415_v59  ;;  %v444_v16 = vsel %vm443_vm8, 1, %v1130_v6  ;;  %v531_v32 = vshrl.u32 %v1126_v43, %v525_v10 }
  0x8f   : > { %v422_v18 = vsel %vm421_vm9, 1, %v1130_v6  ;;  %v446_v20 = vadd.s32 %v444_v16, %v442_v14  ;;  %v533_v33 = vshll.u32 %v1126_v43, %v524_v50  ;;  %v529_v36 = vor.u32 %v528_v27, %v527_v21 }
  0x90   : > { %v424_v28 = vadd.s32 %v422_v18, %v420_v15  ;;  %v534_v38 = vshrl.u32 %v1127_v45, %v525_v10  ;;  %v536_v40 = vshll.u32 %v1127_v45, %v524_v50  ;;  %v1338_v44 = vor.u32 %v531_v32, %v530_v30 }
  0x91   : > { %v447_v35 = vadd.s32 %v446_v20, %v436_v62  ;;  %v537_v47 = vshrl.u32 %v1128_v53, %v525_v10  ;;  %v539_v48 = vshll.u32 %v1128_v53, %v524_v50  ;;  %v518_v54 = vor.u32 8388608, %v1315_v31 }
  0x92   : > { %v425_v41 = vadd.s32 %v424_v28, %v414_v61  ;;  %v540_v55 = vshrl.u32 %v1129_v60, %v525_v10  ;;  %vm542_vm10 = vcmp.lt.s32.totalorder %v1321_v46, 1  ;;  %v449_v57 = vmul.u32 %v1284_v0, %v395_v52 }
  0x93   : > { %v448_v49 = vadd.s32 %v447_v35, %v438_v11  ;;  %v535_v59 = vor.u32 %v534_v38, %v533_v33  ;;  %v538_v62 = vor.u32 %v537_v47, %v536_v40  ;;  %vm544_vm11 = vcmp.lt.s32.totalorder %v1321_v46, 3 }
  0x94   : > { %v1345_v56 = vadd.s32 %v425_v41, %v416_v63  ;;  %v541_v1 = vor.u32 %v540_v55, %v539_v48  ;;  %vm545_vm12 = vcmp.lt.s32.totalorder %v1321_v46, 4  ;;  %vm543_vm14 = vcmp.lt.s32.totalorder %v1321_v46, 2 }
  0x95   : > { %v452_v61 = vadd.s32 1, %v448_v49  ;;  %v550_v31 = vsel %vm542_vm10, %v529_v36, %v1338_v44  ;;  %v269_v0 = vmul.f32 65536.0, %v268_v8  ;;  %v270_v50 = vcvt.s32.f32 %v258_v34 }
  0x96   : > { %vm451_vm13 = vc.u32 %v1345_v56, %v1328_v17  ;;  %v551_v63 = vsel %vm545_vm12, %v538_v62, 920167782  ;;  %v265_v3 = vadd.f32 %v1287_v2, %v1306_v26  ;;  %v554_v42 = vsel %vm542_vm10, %v1338_v44, %v535_v59 }
  0x97   : > { %v453_v52 = vsel %vm451_vm13, %v452_v61, %v448_v49  ;;  %v552_v7 = vsel %vm544_vm11, %v535_v59, %v551_v63  ;;  %v555_v58 = vsel %vm545_vm12, %v541_v1, 1326507024  ;;  %v1373_v34 = vshll.u32 %v518_v54, 8 }
  0x98   : > { %v454_v4 = vadd.s32 %v453_v52, %v449_v57  ;;  %v553_v51 = vsel %vm543_vm14, %v550_v31, %v552_v7  ;;  %v668_v8 = vshrl.u32 %v667_v29, 23  ;;  %v556_v26 = vsel %vm544_vm11, %v538_v62, %v555_v58 }
  0x99   : > { %v583_v11 = vand.u32 65535, %v553_v51  ;;  %v584_v14 = vshrl.u32 %v553_v51, 16  ;;  %v526_v15 = vshrl.u32 %v1124_v37, %v525_v10  ;;  %v557_v16 = vsel %vm543_vm14, %v554_v42, %v556_v26 }
  0x9a   : > { %v455_v2 = vadd.s32 536870912, %v454_v4  ;;  %v559_v18 = vand.u32 65535, %v1373_v34  ;;  %v560_v20 = vshrl.u32 %v1373_v34, 16  ;;  %v259_v21 = vshrl.u32 %v1253_v9, 16 }
  0x9b   : > { %v561_v29 = vand.u32 65535, %v557_v16  ;;  %v562_v28 = vshrl.u32 %v557_v16, 16  ;;  %v271_v30 = vadd.f32 %v270_v50, %v269_v0  ;;  %v278_v32 = vadd.f32 0.5, %v265_v3 }
  0x9c   : > { %v1385_v27 = vshrl.u32 %v455_v2, 30  ;;  %v586_v33 = vmul.u32 %v584_v14, %v559_v18  ;;  %v587_v35 = vmul.u32 %v583_v11, %v560_v20  ;;  %v939_v41 = vadd.s32 4294967169, %v668_v8 }
  0x9d   : > { %v563_v10 = vmul.u32 %v561_v29, %v559_v18  ;;  %v564_v40 = vmul.u32 %v562_v28, %v559_v18  ;;  %v546_v47 = vsel %vm542_vm10, %v526_v15, %v529_v36  ;;  %v565_v48 = vmul.u32 %v561_v29, %v560_v20 }
  0x9e   : > { %v457_v38 = vshll.u32 %v1385_v27, 30  ;;  %v585_v49 = vmul.u32 %v583_v11, %v559_v18  ;;  %v589_v54 = vshll.u32 %v586_v33, 16  ;;  %v547_v57 = vsel %vm545_vm12, %v535_v59, 2102212464 }
  0x9f   : > { %v566_v62 = vmul.u32 %v562_v28, %v560_v20  ;;  %v567_v61 = vshll.u32 %v564_v40, 16  ;;  %v569_v1 = vshll.u32 %v565_v48, 16  ;;  %v588_v31 = vmul.u32 %v584_v14, %v560_v20 }
  0xa0   : > { %v458_v55 = vsub.s32 %v454_v4, %v457_v38  ;;  %v590_v0 = vshrl.u32 %v586_v33, 16  ;;  %v591_v50 = vshll.u32 %v587_v35, 16  ;;  %v568_v3 = vshrl.u32 %v564_v40, 16 }
  0xa1   : > { %vm571_vm0 = vc.u32 %v563_v10, %v567_v61  ;;  %v573_v63 = vadd.s32 %v567_v61, %v563_v10  ;;  %vm593_vm1 = vc.u32 %v585_v49, %v589_v54  ;;  %v595_v7 = vadd.s32 %v589_v54, %v585_v49 }
  0xa2   : > { %vm459_vm15 = vcmp.lt.s32.totalorder %v458_v55, 0  ;;  %v460_v52 = vsub.s32 0, %v458_v55  ;;  %v572_v36 = vsel %vm571_vm0, 1, %v1130_v6  ;;  %v594_v59 = vsel %vm593_vm1, 1, %v1130_v6 }
  0xa3   : > { %v574_v4 = vadd.s32 %v572_v36, %v566_v62  ;;  %vm575_vm2 = vc.u32 %v573_v63, %v569_v1  ;;  %v596_v8 = vadd.s32 %v594_v59, %v588_v31  ;;  %vm597_vm3 = vc.u32 %v595_v7, %v591_v50 }
  0xa4   : > { %v461_v42 = vsel %vm459_vm15, %v460_v52, %v458_v55  ;;  %v576_v58 = vsel %vm575_vm2, 1, %v1130_v6  ;;  %v548_v2 = vsel %vm544_vm11, %v1338_v44, %v547_v57  ;;  %v570_v26 = vshrl.u32 %v565_v48, 16 }
  0xa5   : > { %v462_v51 = vclz %v461_v42  ;;  %v578_v11 = vadd.s32 %v576_v58, %v574_v4  ;;  %v598_v14 = vsel %vm597_vm3, 1, %v1130_v6  ;;  %v272_v15 = vshrl.u32 %v259_v21, 16 }
  0xa6   : > { %v600_v18 = vadd.s32 %v598_v14, %v596_v8  ;;  %v674_v20 = vadd.s32 1, %v939_v41  ;;  %v281_v29 = vmul.f32 1.5258789e-05, %v278_v32  ;;  %v450_v28 = vadd.s32 %v1328_v17, %v1345_v56 }
  0xa7   : > { %v934_v16 = vadd.s32 4294967294, %v462_v51  ;;  %v579_v33 = vadd.s32 %v578_v11, %v568_v3  ;;  %v592_v38 = vshrl.u32 %v587_v35, 16  ;;  %v549_v44 = vsel %vm543_vm14, %v546_v47, %v548_v2 }
  0xa8   : > { %v1405_v10 = vadd.s32 %v595_v7, %v591_v50  ;;  %v601_v40 = vadd.s32 %v600_v18, %v590_v0  ;;  %v279_v48 = vadd.f32 0.5, %v271_v30  ;;  %vm675_vm5 = vcmp.gt.s32.totalorder %v674_v20, 0 }
  0xa9   : > { %vm935_vm4 = vcmp.lt.s32.totalorder %v934_v16, 0  ;;  %v1407_v54 = vadd.s32 %v579_v33, %v570_v26  ;;  %v274_v62 = vcvt.s32.f32 %v272_v15  ;;  %1017 = vlog2.f32 %v281_v29 }
  0xaa   : > { %v465_v49 = vsel %vm935_vm4, 0, %v934_v16  ;;  %v602_v17 = vadd.s32 %v601_v40, %v592_v38  ;;  %v603_v56 = vmul.u32 %v1373_v34, %v549_v44  ;;  %v676_v46 = vsel %vm675_vm5, %v674_v20, 0 }
  0xab   : > { %v466_v57 = vsub.s32 32, %v465_v49  ;;  %v467_v41 = vshll.u32 %v458_v55, %v465_v49  ;;  %v470_v32 = vsub.s32 4294967266, %v465_v49  ;;  %vm605_vm6 = vc.u32 %v1407_v54, %v1405_v10 }
  0xac   : > { %v282_v47 = vmul.f32 1.5258789e-05, %v279_v48  ;;  %v606_v30 = vadd.s32 1, %v602_v17  ;;  %v664_v1 = vand.u32 2147483647, %v1291_v5  ;;  %v678_v31 = vand.u32 31, %v676_v46 }
  0xad   : > { %v468_v35 = vshrl.u32 %v450_v28, %v466_v57  ;;  %v471_v61 = vadd.s32 127, %v470_v32  ;;  %v276_v63 = vcvt.s32.f32 %v259_v21  ;;  %v275_v42 = vmul.f32 65536.0, %v274_v62 }
  0xae   : > { %v607_v55 = vsel %vm605_vm6, %v606_v30, %v602_v17  ;;  %v1413_v52 = vsub.s32 32, %v678_v31  ;;  %1019 = vlog2.f32 %v282_v47  ;;  %v671_v4 = vand.u32 8388607, %v664_v1 }
  0xaf   : > { %v469_v0 = vor.u32 %v468_v35, %v467_v41  ;;  %v472_v50 = vshll.u32 %v471_v61, 23  ;;  %v608_v36 = vadd.s32 %v607_v55, %v603_v56  ;;  %v1018_v7 = vpop.eup %1017  ;;  %v1419_v59 = vshrl.u32 %v676_v46, 5 }
  0xb0   : > { %v684_v8 = vshll.u32 %v1125_v39, %v678_v31  ;;  %v685_v2 = vshrl.u32 %v1126_v43, %v1413_v52  ;;  %v687_v9 = vshll.u32 %v1126_v43, %v678_v31  ;;  %v688_v21 = vshrl.u32 %v1127_v45, %v1413_v52 }
  0xb1   : > { %v473_v34 = vor.u32 4788187, %v472_v50  ;;  %v476_v3 = vcvt.s32.f32 %v469_v0  ;;  %v609_v58 = vadd.s32 536870912, %v608_v36  ;;  %v690_v26 = vshll.u32 %v1127_v45, %v678_v31 }
  0xb2   : > { %v691_v11 = vshrl.u32 %v1128_v53, %v1413_v52  ;;  %v309_v14 = vmul.f32 0.6931472, %v1018_v7  ;;  %v693_v18 = vshll.u32 %v1128_v53, %v678_v31  ;;  %v672_v20 = vor.u32 8388608, %v671_v4 }
  0xb3   : > { %v474_v51 = vand.u32 2147483647, %v473_v34  ;;  %v1430_v16 = vshrl.u32 %v609_v58, 30  ;;  %v681_v29 = vshll.u32 %v1124_v37, %v678_v31  ;;  %v682_v43 = vshrl.u32 %v1125_v39, %v1413_v52 }
  0xb4   : > { %v694_v28 = vshrl.u32 %v1129_v60, %v1413_v52  ;;  %v692_v33 = vor.u32 %v691_v11, %v690_v26  ;;  %v1020_v38 = vpop.eup %1019  ;;  %v1439_v44 = vor.u32 %v685_v2, %v684_v8  ;;  %v1441_v40 = vor.u32 %v688_v21, %v687_v9 }
  0xb5   : > { %v477_v15 = vmul.f32 %v476_v3, %v474_v51  ;;  %v611_v45 = vshll.u32 %v1430_v16, 30  ;;  %vm699_vm7 = vcmp.lt.s32.totalorder %v1419_v59, 4  ;;  %v1444_v53 = vmul.f32 -2.0, %v309_v14 }
  0xb6   : > { %v695_v48 = vor.u32 %v694_v28, %v693_v18  ;;  %vm696_vm8 = vcmp.lt.s32.totalorder %v1419_v59, 1  ;;  %v277_v39 = vadd.f32 %v276_v63, %v275_v42  ;;  %vm358_vm9 = vcmp.lt.s32.totalorder %v1255_v12, 0 }
  0xb7   : > { %v478_v49 = vxor.u32 2147483648, %v477_v15  ;;  %v612_v57 = vsub.s32 %v608_v36, %v611_v45  ;;  %v1448_v60 = vor.u32 %v682_v43, %v681_v29  ;;  %v1450_v41 = vshll.u32 %v672_v20, 8 }
  0xb8   : > { %vm698_vm11 = vcmp.lt.s32.totalorder %v1419_v59, 3  ;;  %v705_v62 = vsel %vm699_vm7, %v692_v33, 920167782  ;;  %vm1457_vm12 = vcmp.le.f32.partialorder %v356_v22, 0.7853982  ;;  %vm697_vm13 = vcmp.lt.s32.totalorder %v1419_v59, 2 }
  0xb9   : > { %vm613_vm10 = vcmp.lt.s32.totalorder %v612_v57, 0  ;;  %v614_v32 = vsub.s32 0, %v612_v57  ;;  %v708_v56 = vsel %vm696_vm8, %v1439_v44, %v1441_v40  ;;  %v709_v35 = vsel %vm699_vm7, %v695_v48, 1326507024 }
  0xba   : > { %v311_v61 = vmul.f32 0.6931472, %v1020_v38  ;;  %1021 = vrsqrt.f32 %v1444_v53  ;;  %v479_v46 = vsel %vm358_vm9, %v478_v49, %v477_v15  ;;  %v704_v30 = vsel %vm696_vm8, %v1448_v60, %v1439_v44 }
  0xbb   : > { %v615_v22 = vsel %vm613_vm10, %v614_v32, %v612_v57  ;;  %v706_v31 = vsel %vm698_vm11, %v1441_v40, %v705_v62  ;;  %v710_v0 = vsel %vm698_vm11, %v692_v33, %v709_v35  ;;  %v713_v55 = vand.u32 65535, %v1450_v41 }
  0xbc   : > { %v616_v47 = vclz %v615_v22  ;;  %v711_v50 = vsel %vm697_vm13, %v708_v56, %v710_v0  ;;  %v1486_v63 = vsel %vm1457_vm12, %v1255_v12, %v479_v46  ;;  %v280_v36 = vadd.f32 0.5, %v277_v39 }
  0xbd   : > { %v716_v3 = vshrl.u32 %v711_v50, 16  ;;  %v1488_v7 = vmul.f32 -2.0, %v311_v61  ;;  %v707_v42 = vsel %vm697_vm13, %v704_v30, %v706_v31  ;;  %v715_v4 = vand.u32 65535, %v711_v50 }
  0xbe   : > { %v937_v34 = vadd.s32 4294967294, %v616_v47  ;;  %v604_v51 = vadd.s32 %v1405_v10, %v1407_v54  ;;  %v714_v58 = vshrl.u32 %v1450_v41, 16  ;;  %v1499_v2 = vmul.f32 %v1486_v63, %v1486_v63 }
  0xbf   : > { %v718_v21 = vmul.u32 %v716_v3, %v713_v55  ;;  %v738_v15 = vshrl.u32 %v707_v42, 16  ;;  %v1501_v18 = vmul.f32 1.5258789e-05, %v280_v36  ;;  %1023 = vrsqrt.f32 %v1488_v7 }
  0xc0   : > { %vm938_vm14 = vcmp.lt.s32.totalorder %v937_v34, 0  ;;  %v1495_v8 = vpop.eup %1021  ;;  %v717_v10 = vmul.u32 %v715_v4, %v713_v55  ;;  %v737_v54 = vand.u32 65535, %v707_v42  ;;  %v719_v28 = vmul.u32 %v715_v4, %v714_v58 }
  0xc1   : > { %v619_v9 = vsel %vm938_vm14, 0, %v937_v34  ;;  %v318_v20 = vmul.f32 %v1495_v8, %v1444_v53  ;;  %v492_v45 = vmul.f32 -0.00019511016, %v1499_v2  ;;  %vm512_vm15 = vcmp.lt.s32.totalorder %v1259_v19, 0 }
  0xc2   : > { %v620_v26 = vsub.s32 32, %v619_v9  ;;  %v621_v11 = vshll.u32 %v612_v57, %v619_v9  ;;  %v624_v14 = vsub.s32 4294967266, %v619_v9  ;;  %v720_v33 = vmul.u32 %v716_v3, %v714_v58 }
  0xc3   : > { %v721_v38 = vshll.u32 %v718_v21, 16  ;;  %vm1510_vm0 = vcmp.le.f32.partialorder %v510_v13, 0.7853982  ;;  %v723_v39 = vshll.u32 %v719_v28, 16  ;;  %v740_v32 = vmul.u32 %v738_v15, %v713_v55 }
  0xc4   : > { %v622_v29 = vshrl.u32 %v604_v51, %v620_v26  ;;  %v625_v43 = vadd.s32 127, %v624_v14  ;;  %v485_v62 = vmul.f32 -0.001358992, %v1499_v2  ;;  %v741_v35 = vmul.u32 %v737_v54, %v714_v58 }
  0xc5   : > { %vm725_vm1 = vc.u32 %v717_v10, %v721_v38  ;;  %v727_v56 = vadd.s32 %v721_v38, %v717_v10  ;;  %v739_v47 = vmul.u32 %v737_v54, %v713_v55  ;;  %v1516_v30 = vpop.eup %1023  ;;  %v493_v13 = vadd.f32 0.008332121, %v492_v45 }
  0xc6   : > { %v623_v49 = vor.u32 %v622_v29, %v621_v11  ;;  %v626_v57 = vshll.u32 %v625_v43, 23  ;;  %v726_v22 = vsel %vm725_vm1, 1, %v1130_v6  ;;  %v722_v31 = vshrl.u32 %v718_v21, 16 }
  0xc7   : > { %v728_v0 = vadd.s32 %v726_v22, %v720_v33  ;;  %vm729_vm2 = vc.u32 %v727_v56, %v723_v39  ;;  %v742_v3 = vmul.u32 %v738_v15, %v714_v58  ;;  %v743_v36 = vshll.u32 %v740_v32, 16 }
  0xc8   : > { %v627_v61 = vor.u32 4788187, %v626_v57  ;;  %v630_v46 = vcvt.s32.f32 %v623_v49  ;;  %v730_v34 = vsel %vm729_vm2, 1, %v1130_v6  ;;  %v680_v42 = vshrl.u32 %v1124_v37, %v1413_v52 }
  0xc9   : > { %v701_v4 = vsel %vm699_vm7, %v1441_v40, 2102212464  ;;  %v732_v51 = vadd.s32 %v730_v34, %v728_v0  ;;  %v745_v55 = vshll.u32 %v741_v35, 16  ;;  %v486_v9 = vadd.f32 0.041655596, %v485_v62 }
  0xca   : > { %v628_v50 = vand.u32 2147483647, %v627_v61  ;;  %vm747_vm3 = vc.u32 %v739_v47, %v743_v36  ;;  %v749_v21 = vadd.s32 %v743_v36, %v739_v47  ;;  %v494_v11 = vmul.f32 %v493_v13, %v1499_v2 }
  0xcb   : > { %v724_v14 = vshrl.u32 %v719_v28, 16  ;;  %v733_v10 = vadd.s32 %v732_v51, %v722_v31  ;;  %v748_v58 = vsel %vm747_vm3, 1, %v1130_v6  ;;  %v744_v54 = vshrl.u32 %v740_v32, 16 }
  0xcc   : > { %v631_v26 = vmul.f32 %v630_v46, %v628_v50  ;;  %v750_v29 = vadd.s32 %v748_v58, %v742_v3  ;;  %vm751_vm4 = vc.u32 %v749_v21, %v745_v55  ;;  %v330_v37 = vmul.f32 %v1516_v30, %v1488_v7 }
  0xcd   : > { %v700_v52 = vsel %vm696_vm8, %v680_v42, %v1448_v60  ;;  %v702_v40 = vsel %vm698_vm11, %v1439_v44, %v701_v4  ;;  %v752_v43 = vsel %vm751_vm4, 1, %v1130_v6  ;;  %v746_v45 = vshrl.u32 %v741_v35, 16 }
  0xce   : > { %v632_v15 = vxor.u32 2147483648, %v631_v26  ;;  %v754_v33 = vadd.s32 %v752_v43, %v750_v29  ;;  %v487_v38 = vmul.f32 %v486_v9, %v1499_v2  ;;  %v1541_v57 = vadd.s32 %v733_v10, %v724_v14 }
  0xcf   : > { %v1543_v60 = vadd.s32 %v749_v21, %v745_v55  ;;  %v495_v39 = vadd.f32 -0.16666654, %v494_v11  ;;  %v703_v6 = vsel %vm697_vm13, %v700_v52, %v702_v40  ;;  %1025 = vlog2.f32 %v1501_v18 }
  0xd0   : > { %v633_v28 = vsel %vm512_vm15, %v632_v15, %v631_v26  ;;  %v755_v44 = vadd.s32 %v754_v33, %v744_v54  ;;  %v319_v62 = vmul.f32 %v1495_v8, %v318_v20  ;;  %v331_v56 = vmul.f32 %v1516_v30, %v330_v37 }
  0xd1   : > { %v636_v49 = vsel %vm1510_vm0, %v1259_v19, %v633_v28  ;;  %v480_v35 = vsub.s32 4, %v1385_v27  ;;  %v488_v47 = vadd.f32 -0.4999988, %v487_v38  ;;  %v634_v13 = vsub.s32 4, %v1430_v16 }
  0xd2   : > { %v638_v32 = vmul.f32 %v636_v49, %v636_v49  ;;  %v756_v22 = vadd.s32 %v755_v44, %v746_v45  ;;  %v757_v31 = vmul.u32 %v1450_v41, %v703_v6  ;;  %vm759_vm5 = vc.u32 %v1541_v57, %v1543_v60 }
  0xd3   : > { %v496_v59 = vmul.f32 %v495_v39, %v1499_v2  ;;  %v320_v50 = vmul.f32 0.5, %v319_v62  ;;  %v332_v4 = vmul.f32 0.5, %v331_v56  ;;  %v481_v51 = vsel %vm358_vm9, %v480_v35, %v1385_v27 }
  0xd4   : > { %v639_v61 = vmul.f32 -0.001358992, %v638_v32  ;;  %v646_v46 = vmul.f32 -0.00019511016, %v638_v32  ;;  %v760_v20 = vadd.s32 1, %v756_v22  ;;  %v635_v41 = vsel %vm512_vm15, %v634_v13, %v1430_v16 }
  0xd5   : > { %v1026_v42 = vpop.eup %1025  ;;  %v489_v9 = vmul.f32 %v488_v47, %v1499_v2  ;;  %v497_v26 = vadd.f32 1.0, %v496_v59  ;;  %v321_v58 = vsub.f32 1.5, %v320_v50  ;;  %v333_v29 = vsub.f32 1.5, %v332_v4 }
  0xd6   : > { %v640_v18 = vadd.f32 0.041655596, %v639_v61  ;;  %v647_v0 = vadd.f32 0.008332121, %v646_v46  ;;  %v761_v36 = vsel %vm759_vm5, %v760_v20, %v756_v22  ;;  %v313_v10 = vmul.f32 0.6931472, %v1026_v42 }
  0xd7   : > { %v762_v55 = vadd.s32 %v761_v36, %v757_v31  ;;  %v483_v37 = vsel %vm1457_vm12, 0, %v481_v51  ;;  %v637_v27 = vsel %vm1510_vm0, 0, %v635_v41  ;;  %v490_v16 = vadd.f32 1.0, %v489_v9 }
  0xd8   : > { %v641_v34 = vmul.f32 %v640_v18, %v638_v32  ;;  %v648_v3 = vmul.f32 %v647_v0, %v638_v32  ;;  %v498_v2 = vmul.f32 %v497_v26, %v1486_v63  ;;  %v500_v45 = vand.u32 3, %v483_v37 }
  0xd9   : > { %v763_v14 = vadd.s32 536870912, %v762_v55  ;;  %v654_v38 = vand.u32 3, %v637_v27  ;;  %v1571_v39 = vmul.f32 -2.0, %v313_v10  ;;  %v322_v17 = vmul.f32 %v1495_v8, %v321_v58 }
  0xda   : > { %v642_v21 = vadd.f32 -0.4999988, %v641_v34  ;;  %v649_v11 = vadd.f32 -0.16666654, %v648_v3  ;;  %vm324_vm6 = vcmp.eq.f32.partialorder %v1444_v53, inf  ;;  %vm326_vm7 = vcmp.eq.f32.partialorder %v1444_v53, 0.0 }
  0xdb   : > { %v1567_v52 = vshrl.u32 %v763_v14, 30  ;;  %v503_v6 = vxor.u32 2147483648, %v498_v2  ;;  %v506_v63 = vxor.u32 2147483648, %v490_v16  ;;  %vm502_vm9 = vcmp.eq.s32.totalorder %v500_v45, 0 }
  0xdc   : > { %v643_v15 = vmul.f32 %v642_v21, %v638_v32  ;;  %v650_v54 = vmul.f32 %v649_v11, %v638_v32  ;;  %v334_v32 = vmul.f32 %v1516_v30, %v333_v29  ;;  %vm505_vm10 = vcmp.eq.s32.totalorder %v500_v45, 2 }
  0xdd   : > { %v765_v28 = vshll.u32 %v1567_v52, 30  ;;  %vm656_vm11 = vcmp.eq.s32.totalorder %v654_v38, 0  ;;  %vm659_vm12 = vcmp.eq.s32.totalorder %v654_v38, 2  ;;  %v327_v8 = vand.u32 2147483648, %v1444_v53 }
  0xde   : > { %v651_v40 = vadd.f32 1.0, %v650_v54  ;;  %v644_v43 = vadd.f32 1.0, %v643_v15  ;;  %v335_v30 = vmul.f32 %v334_v32, %v1488_v7  ;;  %vm336_vm13 = vcmp.eq.f32.partialorder %v1488_v7, inf }
  0xdf   : > { %v766_v48 = vsub.s32 %v762_v55, %v765_v28  ;;  %vm501_vm14 = vcmp.lt.s32.totalorder %v500_v45, 2  ;;  %vm655_vm15 = vcmp.lt.s32.totalorder %v654_v38, 2  ;;  %v504_v46 = vsel %vm502_vm9, %v490_v16, %v503_v6 }
  0xe0   : > { %v652_v33 = vmul.f32 %v651_v40, %v636_v49  ;;  %v660_v62 = vxor.u32 2147483648, %v644_v43  ;;  %v323_v49 = vmul.f32 %v322_v17, %v1444_v53  ;;  %v507_v22 = vsel %vm505_vm10, %v506_v63, %v498_v2 }
  0xe1   : > { %vm767_vm8 = vcmp.lt.s32.totalorder %v766_v48, 0  ;;  %v768_v56 = vsub.s32 0, %v766_v48  ;;  %vm338_vm0 = vcmp.eq.f32.partialorder %v1488_v7, 0.0  ;;  %v339_v31 = vand.u32 2147483648, %v1488_v7 }
  0xe2   : > { %v657_v44 = vxor.u32 2147483648, %v652_v33  ;;  %v661_v13 = vsel %vm659_vm12, %v660_v62, %v652_v33  ;;  %1027 = vrsqrt.f32 %v1571_v39  ;;  %v325_v18 = vsel %vm324_vm6, %v1444_v53, %v323_v49 }
  0xe3   : > { %v769_v35 = vsel %vm767_vm8, %v768_v56, %v766_v48  ;;  %v337_v0 = vsel %vm336_vm13, %v1488_v7, %v335_v30  ;;  %vm499_vm1 = vweird.f32 %v1255_v12  ;;  %vm653_vm2 = vweird.f32 %v1259_v19 }
  0xe4   : > { %v770_v61 = vclz %v769_v35  ;;  %v658_v47 = vsel %vm656_vm11, %v644_v43, %v657_v44  ;;  %v508_v20 = vsel %vm501_vm14, %v504_v46, %v507_v22  ;;  %v758_v34 = vadd.s32 %v1543_v60, %v1541_v57 }
  0xe5   : > { %v662_v50 = vsel %vm655_vm15, %v658_v47, %v661_v13  ;;  %v328_v51 = vsel %vm326_vm7, %v327_v8, %v325_v18  ;;  %v340_v41 = vsel %vm338_vm0, %v339_v31, %v337_v0  ;;  %v509_v12 = vsel %vm499_vm1, nan, %v508_v20 }
  0xe6   : > { %v940_v59 = vadd.s32 4294967294, %v770_v61  ;;  %v663_v55 = vsel %vm653_vm2, nan, %v662_v50  ;;  %v818_v60 = vmul.f32 %v509_v12, %v328_v51  ;;  %v821_v14 = vstv %s1227_s23 }
  0xe7   : > { %v819_v11 = vmul.f32 %v663_v55, %v340_v41  ;;  %vm666_vm4 = vcmp.lt.s32.totalorder %v1291_v5, 0  ;;  %vm1605_vm5 = vcmp.le.f32.partialorder %v664_v1, 0.7853982  ;;  %v788_v45 = vsub.s32 4, %v1567_v52 }
  0xe8   : > { %vm941_vm3 = vcmp.lt.s32.totalorder %v940_v59, 0  ;;  %v1028_v19 = vpop.eup %1027  ;;  %v822_v15 = vmul.f32 %v821_v14, %v818_v60  ;;  %vm348_vm6 = vcmp.eq.f32.partialorder %v1571_v39, inf  ;;  %vm350_vm8 = vcmp.eq.f32.partialorder %v1571_v39, 0.0 }
  0xe9   : > { %v773_v3 = vsel %vm941_vm3, 0, %v940_v59  ;;  %v823_v53 = vmul.f32 %v821_v14, %v819_v11  ;;  %v342_v54 = vmul.f32 %v1028_v19, %v1571_v39  ;;  %v789_v32 = vsel %vm666_vm4, %v788_v45, %v1567_v52 }
  0xea   : > { %v774_v36 = vsub.s32 32, %v773_v3  ;;  %v775_v42 = vshll.u32 %v766_v48, %v773_v3  ;;  %v778_v4 = vsub.s32 4294967266, %v773_v3  ;;  %v825_v29 = vadd.f32 %v822_v15, %v1230_v23 }
  0xeb   : > { %v826_v37 = vadd.f32 %v823_v53, %v1232_v24  ;;  %v343_v16 = vmul.f32 %v1028_v19, %v342_v54  ;;  %v791_v6 = vsel %vm1605_vm5, 0, %v789_v32  ;;  %v351_v52 = vand.u32 2147483648, %v1571_v39 }
  0xec   : > { %v776_v9 = vshrl.u32 %v758_v34, %v774_v36  ;;  %v779_v26 = vadd.s32 127, %v778_v4  ;;  %828 = vst [vmem:[%s1237_s25] sm:$0x3] %v825_v29  ;;  %v808_v8 = vand.u32 3, %v791_v6  ;;  %vm807_vm11 = vweird.f32 %v1291_v5 }
  0xed   : > { %829 = vst [vmem:[%s1237_s25 + $0x2] sm:$0x3] %v826_v37  ;;  %v344_v28 = vmul.f32 0.5, %v343_v16 }
  0xee   : > { %v777_v21 = vor.u32 %v776_v9, %v775_v42  ;;  %v780_v57 = vshll.u32 %v779_v26, 23  ;;  %vm813_vm7 = vcmp.eq.s32.totalorder %v808_v8, 2  ;;  %vm810_vm9 = vcmp.eq.s32.totalorder %v808_v8, 0 }
  0xef   : > { %v345_v17 = vsub.f32 1.5, %v344_v28  ;;  %vm809_vm10 = vcmp.lt.s32.totalorder %v808_v8, 2 }
  0xf0   : > { %v781_v10 = vor.u32 4788187, %v780_v57  ;;  %v784_v58 = vcvt.s32.f32 %v777_v21 }
  0xf1   : > { %v346_v62 = vmul.f32 %v1028_v19, %v345_v17 }
  0xf2   : > { %v782_v7 = vand.u32 2147483647, %v781_v10 }
  0xf3   : > { %v347_v61 = vmul.f32 %v346_v62, %v1571_v39 }
  0xf4   : > { %v785_v27 = vmul.f32 %v784_v58, %v782_v7 }
  0xf5   : > { %v349_v31 = vsel %vm348_vm6, %v1571_v39, %v347_v61 }
  0xf6   : > { %v786_v40 = vxor.u32 2147483648, %v785_v27  ;;  %v352_v0 = vsel %vm350_vm8, %v351_v52, %v349_v31 }
  0xf8   : > { %v787_v43 = vsel %vm666_vm4, %v786_v40, %v785_v27 }
  0xf9   : > { %v790_v23 = vsel %vm1605_vm5, %v1291_v5, %v787_v43 }
  0xfa   : > { %v792_v24 = vmul.f32 %v790_v23, %v790_v23 }
  0xfc   : > { %v793_v33 = vmul.f32 -0.001358992, %v792_v24  ;;  %v800_v38 = vmul.f32 -0.00019511016, %v792_v24 }
  0xfe   : > { %v794_v48 = vadd.f32 0.041655596, %v793_v33  ;;  %v801_v1 = vadd.f32 0.008332121, %v800_v38 }
 0x100   : > { %v795_v63 = vmul.f32 %v794_v48, %v792_v24  ;;  %v802_v44 = vmul.f32 %v801_v1, %v792_v24 }
 0x102   : > { %v796_v56 = vadd.f32 -0.4999988, %v795_v63  ;;  %v803_v49 = vadd.f32 -0.16666654, %v802_v44 }
 0x104   : > { %v797_v30 = vmul.f32 %v796_v56, %v792_v24  ;;  %v804_v35 = vmul.f32 %v803_v49, %v792_v24 }
 0x106   : > { %v798_v46 = vadd.f32 1.0, %v797_v30  ;;  %v805_v22 = vadd.f32 1.0, %v804_v35 }
 0x108   : > { %v806_v47 = vmul.f32 %v805_v22, %v790_v23  ;;  %v814_v13 = vxor.u32 2147483648, %v798_v46 }
 0x10a   : > { %v811_v59 = vxor.u32 2147483648, %v806_v47  ;;  %v815_v18 = vsel %vm813_vm7, %v814_v13, %v806_v47 }
 0x10c   : > { %v812_v20 = vsel %vm810_vm9, %v798_v46, %v811_v59 }
 0x10d   : > { %v816_v50 = vsel %vm809_vm10, %v812_v20, %v815_v18 }
 0x10e   : > { %v817_v34 = vsel %vm807_vm11, nan, %v816_v50 }
 0x10f   : > { %v820_v3 = vmul.f32 %v817_v34, %v352_v0 }
 0x111   : > { %v824_v36 = vmul.f32 %v821_v14, %v820_v3 }
 0x113   : > { %v827_v42 = vadd.f32 %v824_v36, %v1234_v25 }
 0x115   : > { %830 = vst [vmem:[%s1237_s25 + $0x4] sm:$0x3] %v827_v42 }
 0x116 PF: > { %s951_s23 = smul.u32 6, %s1113_s21  ;;  %s845_s4 = sshll.u32 %s1237_s25, 4  ;;  %s846_s4 = int_to_ptr.vmem [resolvable:$true] %s845_s4 }
 0x117   : > { %s832_s11 = scalar_lea.sflag [#allocation6], %s138_s30  ;;  %s1061_s21 = scalar_lea.hbm %s1666_s3, 12 }
 0x118   : > { %s844_s9 = scalar_lea.hbm %s1666_s3, %s951_s23 }
 0x119   : > { %s847_s10 = sshll.u32 %s844_s9, 4  ;;  %s848_s10 = int_to_ptr.hbm [resolvable:$true] %s847_s10 }
 0x11a   : > { %s1055_s12 = sshra.s32 %s848_s10, 4  ;;  %s1056_s12 = int_to_ptr.hbm [resolvable:$true] %s1055_s12 }
 0x11b   : > { %s1057_s13 = scalar_lea.hbm %s1056_s12, 6  ;;  %p1062_p3 = scmp.lt.s32.totalorder %s1056_s12, %s1666_s3 }
 0x11c   : > { %p1058_p0 = scmp.ne.s32.totalorder %s1056_s12, %s1057_s13  ;;  %p1063_p5 = scmp.lt.s32.totalorder %s1061_s21, %s1057_s13 }
 0x11e   : > { %p1059_p1 = pnand %p1058_p0, %p1199_p4  ;;  %p1064_p6 = por %p1063_p5, %p1062_p3 }
 0x120   : > { %p1060_p2 = pneg %p1059_p1 }
 0x122   : > { %p1065_p7 = pnand %p1064_p6, %p1060_p2 }
 0x124   : > { %1068 = shalt.err (!%p1065_p7)
}
 0x125   : > { %s1131_s30 = smov 32   ;;  %s1132_s17 = smov 2  }
 0x126   : > { %952 = dma.vmem_to_hbm [thread:$0]  (%p1199_p4), %s846_s4, 96, %s848_s10, %s832_s11, %s1131_s30, %s1131_s30, %s1132_s17  }
 0x127 PF: > { %p958_p9 = scmp.ge.s32.totalorder %s1121_s22, 2  ;;  %s862_s1 = sand.u32 1, %s1101_s18  }
 0x128   : > { %s863_s27 = scalar_lea.sflag [#allocation6], %s862_s1 }
 0x129   : > { %p955_p10 = pnand %p958_p9, %p1206_p8 }
 0x12b   : > { %p956_p11 = pneg %p955_p10 }
 0x12d   : > { %1096 = dma.done.wait (%p956_p11), %s863_s27, 96  }
 0x12e   : > { %1098 = vsyncadd (%p956_p11), %s863_s27, 4294967200  ;;  %s25_s22 = sadd.s32 1, %s1121_s22   ;;  %s1675_s18 = smov %s1105_s19 }
 0x12f   : > { %p22_p12 = scmp.ge.s32.totalorder %s25_s22, 4   ;;  %s1676_s19 = smov %s1109_s20 }
 0x130   : > { %s1677_s20 = smov %s1212_s29  ;;  %s1678_s21 = smov %s1117_s0 }
 0x131   : > { %s1679_s0 = smov %s1681_s24  ;;  %24 = sbr.rel (!%p22_p12) target bundleno = 10 (0xa), region = 67 }
 0x136   :  { %869 = vsyncpa [#allocation6], 1 }
 0x137   :  { %871 = vsyncpa [#allocation6 + $0x1], 1 }

</bundles_post_ra>
